<compile_context>
chip_gen: v7x
topology: tpu7x:2x2x1
jax: 0.10.0
libtpu: 0.0.40
codegen_flags: <defaults>
</compile_context>

<pallas_src>
import functools

import jax
import jax.numpy as jnp
import numpy as np
from jax.experimental import pallas as pl
from jax.experimental.pallas import tpu as pltpu

_VMEM_LIMIT = 32 * 1024 * 1024   # explicit scoped-VMEM budget (safe on v5e/v6e/v7x)
_LANE = 128                      # lane width: channel / K padding granularity
_EPS = 1e-5
_MAX_TILE_P = 1024               # sweepable; 1024 rows amortizes per-step overhead
_MAX_TILE_K = 1024


# ------------------------------ small helpers -------------------------------

def _round_up(x, m):
    return (x + m - 1) // m * m


def _choose_tile_p(p, max_tp=_MAX_TILE_P):
    """Pick (tp, p_pad) with tp | p_pad, tp % 8 == 0 and >=2 P tiles whenever
    P allows (so dimension_semantics='parallel' can shard across v7x's 2 TCs)."""
    p8 = _round_up(max(p, 1), 8)
    tp = min(max_tp, p8)
    if p8 // tp < 2 and p8 >= 16:
        tp = _round_up(p8 // 2, 8)
    p_pad = _round_up(p8, tp)
    return tp, p_pad


def _choose_tile_k(k_pad, max_tk=_MAX_TILE_K):
    """Largest multiple-of-128 divisor of k_pad that is <= max_tk (never drops
    K columns, unlike the old min(512, k_pad))."""
    best = _LANE
    t = _LANE
    while t <= min(max_tk, k_pad):
        if k_pad % t == 0:
            best = t
        t += _LANE
    return best


# ----------------------------- Pallas kernels -------------------------------

def _conv_bn_stats_kernel(p_ref, w_ref, o_ref, stats_ref, acc_ref, *, tk):
    """Tiled matmul (bf16 in, f32 acc) + per-P-tile BN partial stats.

    The full padded weight matrix is VMEM-resident (constant-index BlockSpec);
    each K step slices it with pl.ds. Output is written in bf16 from the f32
    accumulator; the stats are taken from the f32 accumulator before the cast.
    """
    k = pl.program_id(1)

    @pl.when(k == 0)
    def _():
        acc_ref[...] = jnp.zeros_like(acc_ref)

    start = pl.multiple_of(k * tk, _LANE)
    w_tile = w_ref[pl.ds(start, tk), :]
    acc_ref[...] += jnp.dot(p_ref[...], w_tile,
                            preferred_element_type=jnp.float32)

    @pl.when(k == pl.num_programs(1) - 1)
    def _():
        acc = acc_ref[...]
        o_ref[...] = acc.astype(o_ref.dtype)
        s_row = jnp.sum(acc, axis=0, keepdims=True)          # [1, C]
        q_row = jnp.sum(acc * acc, axis=0, keepdims=True)    # [1, C]
        stats_ref[...] = jnp.concatenate([s_row, q_row], axis=0).reshape(1, 2, -1)


def _bn_add_shortcut_kernel(x_ref, sc_ref, ss_ref, o_ref):
    """Fused BN2-apply + shortcut-BN-apply + residual add (one tiled pass).
    bf16 loads, f32 VPU math, f32 store (module output)."""
    ss = ss_ref[...]                                          # [4, C] f32
    y = x_ref[...].astype(jnp.float32) * ss[0:1, :] + ss[1:2, :]
    s = sc_ref[...].astype(jnp.float32) * ss[2:3, :] + ss[3:4, :]
    o_ref[...] = (y + s).astype(o_ref.dtype)


# ----------------------------- Pallas wrappers ------------------------------

def pallas_conv_bn_stats(patches, w_full, *, tp, tk):
    """patches [P_pad, K_pad] bf16, w_full [K_pad, C_pad] bf16 (VMEM-resident)
    -> (conv out [P_pad, C_pad] bf16, partial stats [nP, 2, C_pad] f32)."""
    p_pad, k_pad = patches.shape
    c_pad = w_full.shape[1]
    n_p, n_k = p_pad // tp, k_pad // tk
    kern = functools.partial(_conv_bn_stats_kernel, tk=tk)
    grid_spec = pltpu.PrefetchScalarGridSpec(
        num_scalar_prefetch=0,
        grid=(n_p, n_k),                                   # reduction axis last
        in_specs=[
            pl.BlockSpec((tp, tk), lambda i, k: (i, k)),
            # Constant-index full-weight block: DMA'd once, stays in VMEM.
            pl.BlockSpec((k_pad, c_pad), lambda i, k: (0, 0)),
        ],
        out_specs=[
            pl.BlockSpec((tp, c_pad), lambda i, k: (i, 0)),
            pl.BlockSpec((1, 2, c_pad), lambda i, k: (i, 0, 0)),
        ],
        scratch_shapes=[pltpu.VMEM((tp, c_pad), jnp.float32)],
    )
    return pl.pallas_call(
        kern,
        out_shape=(jax.ShapeDtypeStruct((p_pad, c_pad), jnp.bfloat16),
                   jax.ShapeDtypeStruct((n_p, 2, c_pad), jnp.float32)),
        grid_spec=grid_spec,
        compiler_params=pltpu.CompilerParams(
            dimension_semantics=("parallel", "arbitrary"),
            vmem_limit_bytes=_VMEM_LIMIT),
    )(patches, w_full)


def pallas_bn_add_shortcut(x, sc, ss, *, tp):
    """x [P_pad, C_pad] bf16, sc [P_pad, C_pad] bf16, ss [4, C_pad] f32
    -> f32 [P_pad, C_pad] = (x*s2+b2) + (sc*ssc+bsc)."""
    p_pad, c_pad = x.shape
    n_p = p_pad // tp
    grid_spec = pltpu.PrefetchScalarGridSpec(
        num_scalar_prefetch=0,
        grid=(n_p,),
        in_specs=[pl.BlockSpec((tp, c_pad), lambda i: (i, 0)),
                  pl.BlockSpec((tp, c_pad), lambda i: (i, 0)),
                  pl.BlockSpec((4, c_pad), lambda i: (0, 0))],
        out_specs=pl.BlockSpec((tp, c_pad), lambda i: (i, 0)),
    )
    return pl.pallas_call(
        _bn_add_shortcut_kernel,
        out_shape=jax.ShapeDtypeStruct((p_pad, c_pad), jnp.float32),
        grid_spec=grid_spec,
        compiler_params=pltpu.CompilerParams(
            dimension_semantics=("parallel",),
            vmem_limit_bytes=_VMEM_LIMIT),
    )(x, sc, ss)


# ------------------------------ host-side glue ------------------------------
# (All of this runs under the enclosing jax.jit, so pads / slices / casts fuse
#  into single producer passes.)

def _im2col_padded(x_nhwc, ksize, stride, padding, p_pad, k_pad):
    """x [N,H,W,C] (any float dtype) -> bf16 patches [p_pad, k_pad], column
    order (c, kh, kw) to match w.reshape(Cout, Cin*k*k).T. Single fused pass:
    cast to bf16 up front, then pad/slice/stack/reshape/pad."""
    N, H, W, C = x_nhwc.shape
    Ho = (H + 2 * padding - ksize) // stride + 1
    Wo = (W + 2 * padding - ksize) // stride + 1
    xp = jnp.pad(x_nhwc.astype(jnp.bfloat16),
                 ((0, 0), (padding, padding), (padding, padding), (0, 0)))
    cols = []
    for kh in range(ksize):
        for kw in range(ksize):
            cols.append(xp[:, kh:kh + Ho * stride:stride,
                           kw:kw + Wo * stride:stride, :])       # [N,Ho,Wo,C]
    patches = jnp.stack(cols, axis=-1)                            # [N,Ho,Wo,C,k*k]
    P, K = N * Ho * Wo, C * ksize * ksize
    patches = patches.reshape(P, K)
    return jnp.pad(patches, ((0, p_pad - P), (0, k_pad - K))), Ho, Wo, P


def _conv2d_bn(x_nhwc, w_oihw, stride, padding, c_pad):
    """im2col conv (bf16 MXU, f32 acc) fused with BN partial stats.
    Conv bias intentionally omitted (cancels exactly under training-mode BN).
    Returns (out bf16 [P_pad, c_pad], stats f32 [nP, 2, c_pad], Ho, Wo, P, tp)."""
    Cout, Cin, kh, kw = w_oihw.shape
    N, H, W, _ = x_nhwc.shape
    Ho = (H + 2 * padding - kh) // stride + 1
    Wo = (W + 2 * padding - kw) // stride + 1
    P = N * Ho * Wo
    K = Cin * kh * kw
    tp, p_pad = _choose_tile_p(P)
    k_pad = _round_up(K, _LANE)
    tk = _choose_tile_k(k_pad)
    patches, Ho, Wo, P = _im2col_padded(x_nhwc, kh, stride, padding, p_pad, k_pad)
    w_mat = w_oihw.reshape(Cout, K).T                            # [K, Cout], (c,kh,kw)
    w_full = jnp.pad(w_mat, ((0, k_pad - K), (0, c_pad - Cout))).astype(jnp.bfloat16)
    out, stats = pallas_conv_bn_stats(patches, w_full, tp=tp, tk=tk)
    return out, stats, Ho, Wo, P, tp


def _bn_scale_shift(stats, gamma, beta, count, c_pad, eps=_EPS):
    """Reduce partial stats -> per-channel (scale, shift). Plain jnp (fused
    under jit): ~c_pad elements of work, not worth a kernel launch.
    Padded channels get gamma=0 -> scale=0, shift=0 (keeps padded columns 0)."""
    total = jnp.sum(stats, axis=0)                               # [2, c_pad] f32
    mean = total[0] / count
    var = total[1] / count - mean * mean                         # biased variance
    g = jnp.zeros((c_pad,), jnp.float32).at[:gamma.shape[0]].set(
        gamma.astype(jnp.float32))
    b = jnp.zeros((c_pad,), jnp.float32).at[:beta.shape[0]].set(
        beta.astype(jnp.float32))
    scale = g * jax.lax.rsqrt(var + eps)
    shift = b - mean * scale
    return scale, shift


def init_params(key, ch_in, ch_out):
    ks = jax.random.split(key, 3)
    p = {
        "w1": 0.1 * jax.random.normal(ks[0], (ch_out, ch_in, 3, 3), jnp.float32),
        "b1": 0.05 * jnp.arange(ch_out, dtype=jnp.float32),
        "g1": jnp.ones((ch_out,), jnp.float32),
        "be1": jnp.zeros((ch_out,), jnp.float32),
        "w2": 0.1 * jax.random.normal(ks[1], (ch_out, ch_out, 3, 3), jnp.float32),
        "b2": -0.03 * jnp.arange(ch_out, dtype=jnp.float32),
        "g2": jnp.ones((ch_out,), jnp.float32),
        "be2": jnp.zeros((ch_out,), jnp.float32),
    }
    if ch_in != ch_out:
        p.update({
            "we": 0.1 * jax.random.normal(ks[2], (ch_out, ch_in, 1, 1), jnp.float32),
            "be_b": 0.02 * jnp.arange(ch_out, dtype=jnp.float32),
            "ge": jnp.ones((ch_out,), jnp.float32),
            "bee": jnp.zeros((ch_out,), jnp.float32),
        })
    return p


@functools.partial(jax.jit, static_argnums=(2, 3, 4))
def frac_blk_forward(x_nchw, params, stride, ch_in, ch_out):
    N = x_nchw.shape[0]
    x = jnp.transpose(x_nchw, (0, 2, 3, 1)).astype(jnp.float32)   # NHWC
    c_pad = _round_up(ch_out, _LANE)

    # conv1 (3x3, stride, pad 1) fused with BN1 partial stats
    c1, st1, Ho, Wo, P1, _ = _conv2d_bn(x, params["w1"], stride, 1, c_pad)
    s1, b1 = _bn_scale_shift(st1, params["g1"], params["be1"], P1, c_pad)

    # BN1-apply + ReLU is folded into the (jit-fused) patch build for conv2:
    # c1 stays bf16 in HBM; no standalone o1 round trip, and conv2's spatial
    # zero padding is applied to the *post-activation* values, matching the
    # reference exactly.
    o1 = jnp.maximum(
        c1[:P1, :ch_out].astype(jnp.float32) * s1[None, :ch_out] + b1[None, :ch_out],
        0.0)
    o1_nhwc = o1.reshape(N, Ho, Wo, ch_out)

    # conv2 (3x3, stride 1, pad 1) fused with BN2 partial stats
    c2, st2, Ho2, Wo2, P2, tp2 = _conv2d_bn(o1_nhwc, params["w2"], 1, 1, c_pad)
    s2, b2 = _bn_scale_shift(st2, params["g2"], params["be2"], P2, c_pad)

    # shortcut branch
    if ch_in != ch_out:
        sc, st_sc, _, _, Psc, _ = _conv2d_bn(x, params["we"], stride, 0, c_pad)
        ssc, bsc = _bn_scale_shift(st_sc, params["ge"], params["bee"], Psc, c_pad)
        assert sc.shape == c2.shape, (sc.shape, c2.shape)
    else:
        # nn.Sequential() identity shortcut (only shape-valid when stride == 1).
        # Single fused bf16 pad/copy (was an extra f32 pad pass before).
        assert stride == 1, "identity shortcut requires stride == 1"
        sc_rows = x.reshape(N * Ho2 * Wo2, ch_out).astype(jnp.bfloat16)
        sc = jnp.pad(sc_rows, ((0, c2.shape[0] - P2), (0, c_pad - ch_out)))
        ssc = jnp.ones((c_pad,), jnp.float32)
        bsc = jnp.zeros((c_pad,), jnp.float32)

    # fused BN2-apply + shortcut-BN-apply + residual add (single tiled pass)
    ss = jnp.stack([s2, b2, ssc, bsc], axis=0)                    # [4, c_pad] f32
    out = pallas_bn_add_shortcut(c2, sc, ss, tp=tp2)              # f32 [P2_pad, c_pad]
    out = out[:P2, :ch_out].reshape(N, Ho2, Wo2, ch_out)
    return jnp.transpose(out, (0, 3, 1, 2))                       # back to NCHW


# --------------------------- pure-JAX reference -----------------------------

def _ref_forward(x, p, stride, ch_in, ch_out):
    # Reference mirrors the kernel's MXU precision choice (bf16 conv inputs,
    # f32 accumulation) — standard TPU practice.
    def conv(x, w, b, s, pad):
        y = jax.lax.conv_general_dilated(
            x.astype(jnp.bfloat16), w.astype(jnp.bfloat16), (s, s),
            [(pad, pad), (pad, pad)],
            dimension_numbers=("NCHW", "OIHW", "NCHW"),
            preferred_element_type=jnp.float32)
        return y + b.reshape(1, -1, 1, 1)

    def bn(x, g, be, eps=_EPS):
        m = x.mean(axis=(0, 2, 3), keepdims=True)
        v = x.var(axis=(0, 2, 3), keepdims=True)                  # biased
        return (x - m) * jax.lax.rsqrt(v + eps) * g.reshape(1, -1, 1, 1) \
            + be.reshape(1, -1, 1, 1)

    out = jax.nn.relu(bn(conv(x, p["w1"], p["b1"], stride, 1), p["g1"], p["be1"]))
    out = bn(conv(out, p["w2"], p["b2"], 1, 1), p["g2"], p["be2"])
    if ch_in != ch_out:
        sc = bn(conv(x, p["we"], p["be_b"], stride, 0), p["ge"], p["bee"])
    else:
        sc = x
    return sc + out


# --------------------------------- main --------------------------------------

if __name__ == "__main__":
    key = jax.random.PRNGKey(0)

    # Tolerances are widened slightly vs an all-f32 pipeline because the
    # kernel path keeps its large intermediates (c1/c2/shortcut) in bf16.
    ATOL, RTOL = 5e-2, 2e-2

    # Case 1: projection shortcut (ch_in != ch_out), stride 2.
    N, Cin, H, W = 2, 4, 16, 16
    Cout, stride = 8, 2
    kx, kp, key = jax.random.split(key, 3)
    x = jax.random.normal(kx, (N, Cin, H, W), jnp.float32)
    params = init_params(kp, Cin, Cout)
    y = jax.block_until_ready(frac_blk_forward(x, params, stride, Cin, Cout))
    assert y.shape == (N, Cout, H // stride, W // stride), y.shape
    y_ref = _ref_forward(x, params, stride, Cin, Cout)
    np.testing.assert_allclose(np.asarray(y), np.asarray(y_ref),
                               atol=ATOL, rtol=RTOL)

    # Case 2: identity shortcut (ch_in == ch_out), stride 1.
    kx2, kp2 = jax.random.split(key)
    x2 = jax.random.normal(kx2, (N, Cout, H, W), jnp.float32)
    params2 = init_params(kp2, Cout, Cout)
    y2 = jax.block_until_ready(frac_blk_forward(x2, params2, 1, Cout, Cout))
    assert y2.shape == (N, Cout, H, W), y2.shape
    y2_ref = _ref_forward(x2, params2, 1, Cout, Cout)
    np.testing.assert_allclose(np.asarray(y2), np.asarray(y2_ref),
                               atol=ATOL, rtol=RTOL)

    print("KERNEL_OK")
</pallas_src>

<mosaic_0001>
module attributes {stable_mosaic.version = 11 : i64} {
  func.func @_conv_bn_stats_kernel(%arg0: i32, %arg1: i32, %arg2: memref<64x128xbf16, #tpu.memory_space<vmem>>, %arg3: memref<128x128xbf16, #tpu.memory_space<vmem>>, %arg4: memref<64x128xbf16, #tpu.memory_space<vmem>>, %arg5: memref<1x2x128xf32, #tpu.memory_space<vmem>>, %arg6: memref<64x128xf32, #tpu.memory_space<vmem>>) attributes {dimension_semantics = [#tpu.dimension_semantics<parallel>, #tpu.dimension_semantics<arbitrary>], iteration_bounds = array<i64: 2, 1>, scalar_prefetch = 0 : i64, scratch_operands = 1 : i64, tpu.core_type = #tpu.core_type<tc>, window_params = [{transform_indices = @transform_0, window_bounds = array<i64: 64, 128>}, {pipeline_mode = #tpu.pipeline_mode<synchronous>, transform_indices = @transform_1, window_bounds = array<i64: 128, 128>}, {transform_indices = @transform_2, window_bounds = array<i64: 64, 128>}, {transform_indices = @transform_3, window_bounds = array<i64: 1, 2, 128>}]} {
    %c0_i32 = arith.constant 0 : i32
    %0 = arith.cmpi eq, %arg1, %c0_i32 : i32
    %1 = arith.extui %0 : i1 to i32
    %c0_i32_0 = arith.constant 0 : i32
    %2 = arith.cmpi ne, %1, %c0_i32_0 : i32
    scf.if %2 {
      %cst_9 = arith.constant 0.000000e+00 : f32
      %15 = vector.broadcast %cst_9 : f32 to vector<64x128xf32>
      %c0_10 = arith.constant 0 : index
      %c0_11 = arith.constant 0 : index
      %16 = vector.load %arg6[%c0_10, %c0_11] : memref<64x128xf32, #tpu.memory_space<vmem>>, vector<64x128xf32>
      tpu.vector_store %arg6[%c0_10, %c0_11], %15 {strides = array<i32>} : memref<64x128xf32, #tpu.memory_space<vmem>>, vector<64x128xf32>,
    } else {
    }
    %c128_i32 = arith.constant 128 : i32
    %3 = arith.muli %arg1, %c128_i32 : i32
    %4 = tpu.assume_multiple %3, 128 : i32
    %5 = arith.index_cast %4 : i32 to index
    %c0 = arith.constant 0 : index
    %6 = vector.load %arg3[%5, %c0] : memref<128x128xbf16, #tpu.memory_space<vmem>>, vector<128x128xbf16>
    %c0_1 = arith.constant 0 : index
    %c0_2 = arith.constant 0 : index
    %7 = vector.load %arg6[%c0_1, %c0_2] : memref<64x128xf32, #tpu.memory_space<vmem>>, vector<64x128xf32>
    %c0_3 = arith.constant 0 : index
    %c0_4 = arith.constant 0 : index
    %8 = vector.load %arg2[%c0_3, %c0_4] : memref<64x128xbf16, #tpu.memory_space<vmem>>, vector<64x128xbf16>
    %cst = arith.constant dense<0.000000e+00> : vector<64x128xf32>
    %9 = tpu.matmul %8, %6, %cst {dimension_numbers = #tpu.dot_dimension_numbers<[1], [0], [0], [1], [0, 0, 1, 1], [], []>} : vector<64x128xbf16>, vector<128x128xbf16>, vector<64x128xf32> -> vector<64x128xf32>
    %10 = arith.addf %7, %9 : vector<64x128xf32>
    %c0_5 = arith.constant 0 : index
    %c0_6 = arith.constant 0 : index
    %11 = vector.load %arg6[%c0_5, %c0_6] : memref<64x128xf32, #tpu.memory_space<vmem>>, vector<64x128xf32>
    tpu.vector_store %arg6[%c0_5, %c0_6], %10 {strides = array<i32>} : memref<64x128xf32, #tpu.memory_space<vmem>>, vector<64x128xf32>,
    %c0_i32_7 = arith.constant 0 : i32
    %12 = arith.cmpi eq, %arg1, %c0_i32_7 : i32
    %13 = arith.extui %12 : i1 to i32
    %c0_i32_8 = arith.constant 0 : i32
    %14 = arith.cmpi ne, %13, %c0_i32_8 : i32
    scf.if %14 {
      %c0_9 = arith.constant 0 : index
      %c0_10 = arith.constant 0 : index
      %15 = vector.load %arg6[%c0_9, %c0_10] : memref<64x128xf32, #tpu.memory_space<vmem>>, vector<64x128xf32>
      %16 = arith.truncf %15 : vector<64x128xf32> to vector<64x128xbf16>
      %c0_11 = arith.constant 0 : index
      %c0_12 = arith.constant 0 : index
      %17 = vector.load %arg4[%c0_11, %c0_12] : memref<64x128xbf16, #tpu.memory_space<vmem>>, vector<64x128xbf16>
      tpu.vector_store %arg4[%c0_11, %c0_12], %16 {strides = array<i32>} : memref<64x128xbf16, #tpu.memory_space<vmem>>, vector<64x128xbf16>,
      %cst_13 = arith.constant dense<0.000000e+00> : vector<128xf32>
      %18 = vector.multi_reduction <add>, %15, %cst_13 [0] : vector<64x128xf32> to vector<128xf32>
      %19 = vector.shape_cast %18 : vector<128xf32> to vector<1x128xf32>
      %20 = arith.mulf %15, %15 : vector<64x128xf32>
      %cst_14 = arith.constant dense<0.000000e+00> : vector<128xf32>
      %21 = vector.multi_reduction <add>, %20, %cst_14 [0] : vector<64x128xf32> to vector<128xf32>
      %22 = vector.shape_cast %21 : vector<128xf32> to vector<1x128xf32>
      %23 = tpu.concatenate %19, %22 in 0 : vector<1x128xf32>, vector<1x128xf32> -> vector<2x128xf32>
      %24 = vector.shape_cast %23 : vector<2x128xf32> to vector<1x2x128xf32>
      %c0_15 = arith.constant 0 : index
      %c0_16 = arith.constant 0 : index
      %c0_17 = arith.constant 0 : index
      %25 = vector.load %arg5[%c0_15, %c0_16, %c0_17] : memref<1x2x128xf32, #tpu.memory_space<vmem>>, vector<1x2x128xf32>
      tpu.vector_store %arg5[%c0_15, %c0_16, %c0_17], %24 {strides = array<i32>} : memref<1x2x128xf32, #tpu.memory_space<vmem>>, vector<1x2x128xf32>,
    } else {
    }
    return
  }
  func.func @transform_0(%arg0: i32, %arg1: i32) -> (i32, i32) {
    %c0_i32 = arith.constant 0 : i32
    return %arg0, %arg1 : i32, i32
  }
  func.func @transform_1(%arg0: i32, %arg1: i32) -> (i32, i32) {
    %c0_i32 = arith.constant 0 : i32
    %c0_i32_0 = arith.constant 0 : i32
    %c0_i32_1 = arith.constant 0 : i32
    return %c0_i32, %c0_i32_0 : i32, i32
  }
  func.func @transform_2(%arg0: i32, %arg1: i32) -> (i32, i32) {
    %c0_i32 = arith.constant 0 : i32
    %c0_i32_0 = arith.constant 0 : i32
    return %arg0, %c0_i32 : i32, i32
  }
  func.func @transform_3(%arg0: i32, %arg1: i32) -> (i32, i32, i32) {
    %c0_i32 = arith.constant 0 : i32
    %c0_i32_0 = arith.constant 0 : i32
    %c0_i32_1 = arith.constant 0 : i32
    return %arg0, %c0_i32, %c0_i32_0 : i32, i32, i32
  }
}

module attributes {stable_mosaic.version = 11 : i64} {
  func.func @_bn_add_shortcut_kernel(%arg0: i32, %arg1: memref<64x128xbf16, #tpu.memory_space<vmem>>, %arg2: memref<64x128xbf16, #tpu.memory_space<vmem>>, %arg3: memref<4x128xf32, #tpu.memory_space<vmem>>, %arg4: memref<64x128xf32, #tpu.memory_space<vmem>>) attributes {dimension_semantics = [#tpu.dimension_semantics<parallel>], iteration_bounds = array<i64: 2>, scalar_prefetch = 0 : i64, scratch_operands = 0 : i64, tpu.core_type = #tpu.core_type<tc>, window_params = [{transform_indices = @transform_0, window_bounds = array<i64: 64, 128>}, {transform_indices = @transform_1, window_bounds = array<i64: 64, 128>}, {pipeline_mode = #tpu.pipeline_mode<synchronous>, transform_indices = @transform_2, window_bounds = array<i64: 4, 128>}, {transform_indices = @transform_3, window_bounds = array<i64: 64, 128>}]} {
    %c0 = arith.constant 0 : index
    %c0_0 = arith.constant 0 : index
    %0 = vector.load %arg3[%c0, %c0_0] : memref<4x128xf32, #tpu.memory_space<vmem>>, vector<4x128xf32>
    %c0_1 = arith.constant 0 : index
    %c0_2 = arith.constant 0 : index
    %1 = vector.load %arg1[%c0_1, %c0_2] : memref<64x128xbf16, #tpu.memory_space<vmem>>, vector<64x128xbf16>
    %2 = arith.extf %1 : vector<64x128xbf16> to vector<64x128xf32>
    %3 = vector.extract_strided_slice %0 {offsets = [0, 0], sizes = [1, 128], strides = [1, 1]} : vector<4x128xf32> to vector<1x128xf32>
    %4 = vector.broadcast %3 : vector<1x128xf32> to vector<64x128xf32>
    %5 = arith.mulf %2, %4 : vector<64x128xf32>
    %6 = vector.extract_strided_slice %0 {offsets = [1, 0], sizes = [1, 128], strides = [1, 1]} : vector<4x128xf32> to vector<1x128xf32>
    %7 = vector.broadcast %6 : vector<1x128xf32> to vector<64x128xf32>
    %8 = arith.addf %5, %7 : vector<64x128xf32>
    %c0_3 = arith.constant 0 : index
    %c0_4 = arith.constant 0 : index
    %9 = vector.load %arg2[%c0_3, %c0_4] : memref<64x128xbf16, #tpu.memory_space<vmem>>, vector<64x128xbf16>
    %10 = arith.extf %9 : vector<64x128xbf16> to vector<64x128xf32>
    %11 = vector.extract_strided_slice %0 {offsets = [2, 0], sizes = [1, 128], strides = [1, 1]} : vector<4x128xf32> to vector<1x128xf32>
    %12 = vector.broadcast %11 : vector<1x128xf32> to vector<64x128xf32>
    %13 = arith.mulf %10, %12 : vector<64x128xf32>
    %14 = vector.extract_strided_slice %0 {offsets = [3, 0], sizes = [1, 128], strides = [1, 1]} : vector<4x128xf32> to vector<1x128xf32>
    %15 = vector.broadcast %14 : vector<1x128xf32> to vector<64x128xf32>
    %16 = arith.addf %13, %15 : vector<64x128xf32>
    %17 = arith.addf %8, %16 : vector<64x128xf32>
    %c0_5 = arith.constant 0 : index
    %c0_6 = arith.constant 0 : index
    %18 = vector.load %arg4[%c0_5, %c0_6] : memref<64x128xf32, #tpu.memory_space<vmem>>, vector<64x128xf32>
    tpu.vector_store %arg4[%c0_5, %c0_6], %17 {strides = array<i32>} : memref<64x128xf32, #tpu.memory_space<vmem>>, vector<64x128xf32>,
    return
  }
  func.func @transform_0(%arg0: i32) -> (i32, i32) {
    %c0_i32 = arith.constant 0 : i32
    %c0_i32_0 = arith.constant 0 : i32
    return %arg0, %c0_i32 : i32, i32
  }
  func.func @transform_1(%arg0: i32) -> (i32, i32) {
    %c0_i32 = arith.constant 0 : i32
    %c0_i32_0 = arith.constant 0 : i32
    return %arg0, %c0_i32 : i32, i32
  }
  func.func @transform_2(%arg0: i32) -> (i32, i32) {
    %c0_i32 = arith.constant 0 : i32
    %c0_i32_0 = arith.constant 0 : i32
    %c0_i32_1 = arith.constant 0 : i32
    return %c0_i32, %c0_i32_0 : i32, i32
  }
  func.func @transform_3(%arg0: i32) -> (i32, i32) {
    %c0_i32 = arith.constant 0 : i32
    %c0_i32_0 = arith.constant 0 : i32
    return %arg0, %c0_i32 : i32, i32
  }
}

</mosaic_0001>

<bundles_post_ra>
// kernel: frac_blk_forward.4
= control target key start
LH: loop header
LB: loop body
LE: loop exit
PB: predicated region body
PF: predicated region fallthrough
CT: control target
= control target key end

     0   :  { %s795_s12 = smov 0   ;;  %s797_s13 = smov 0   ;;  %s873_s0 = inlined_call_operand.vmem [shape: bf16[128,128], index: 0, kind: input, shape index: {}]   ;;  %s874_s1 = inlined_call_operand.vmem [shape: bf16[128,128], index: 1, kind: input, shape index: {}]   ;;  %s875_s2 = inlined_call_operand.vmem [shape: bf16[128,128], index: 2, kind: output, shape index: {0}]   ;;  %s876_s3 = inlined_call_operand.vmem [shape: f32[2,2,128], index: 3, kind: output, shape index: {1}]  }
   0x1   :  { %s799_s14 = smov 0  }
   0x2 LB: > { %s26_s15 = sadd.s32 1, %s769_s13  ;;  %p604_p0 = scmp.ge.s32.totalorder %s773_s14, 1  ;;  %s773_s14 = sphi %s799_s14, %s14_s14   ;;  %s769_s13 = sphi %s797_s13, %s878_s13   ;;  %s765_s12 = sphi %s795_s12, %s877_s12  }
   0x3   : > { %p28_p1 = scmp.ge.s32.totalorder %s26_s15, 2  ;;  %p158_p2 = scmp.lt.s32.totalorder %s773_s14, 3 }
   0x5   : > { %s880_s15 = smov (%p28_p1, %s26_s15), 0  ;;  %p159_p3 = pnand %p604_p0, %p158_p2 }
   0x6   : > { %v739_v0 = vld [vmem:[%s874_s1] sm:$0xff] (!%p159_p3)   ;;  %s605_s18 = sshll.u32 (!%p159_p3), %s765_s12, 3  ;;  %v740_v1 = vld [vmem:[%s874_s1 + $0x8] sm:$0xff] (!%p159_p3)   ;;  %v741_v2 = vld [vmem:[%s874_s1 + $0x10] sm:$0xff] (!%p159_p3)   ;;  %p204_p5 = scmp.lt.s32.totalorder (!%p159_p3), %s765_s12, 1  ;;  %vm496_vm0 = vcmask (!%p159_p3), 1040384  }
   0x7   : > { %162 = sbr.rel (%p159_p3) target bundleno = 284 (0x11c), region = 28  ;;  %p190_p4 = scmp.lt.s32.totalorder (!%p159_p3), %s605_s18, 15  ;;  %675 = vmatprep.subr.bf16.mxu0 (!%p159_p3), %v739_v0  ;;  %699 = vmatprep.subr.bf16.mxu1 (!%p159_p3), %v739_v0  ;;  %v742_v3 = vld [vmem:[%s874_s1 + $0x18] sm:$0xff] (!%p159_p3)   ;;  %v743_v6 = vld [vmem:[%s874_s1 + $0x20] sm:$0xff] (!%p159_p3)   ;;  %v744_v7 = vld [vmem:[%s874_s1 + $0x28] sm:$0xff] (!%p159_p3)  }
   0x8   : > { %676 = vmatpush3.bf16.msra.mxu0 (!%p159_p3), %v739_v0  ;;  %707 = vmatpush3.bf16.msra.mxu1 (!%p159_p3), %v739_v0  ;;  %v745_v8 = vld [vmem:[%s874_s1 + $0x30] sm:$0xff] (!%p159_p3)   ;;  %v746_v9 = vld [vmem:[%s874_s1 + $0x38] sm:$0xff] (!%p159_p3)  }
   0x9   : > { %677 = vmatprep.subr.bf16.mxu0 (!%p159_p3), %v740_v1  ;;  %700 = vmatprep.subr.bf16.mxu1 (!%p159_p3), %v740_v1 }
   0xc   : > { %678 = vmatpush3.bf16.msra.mxu0 (!%p159_p3), %v740_v1  ;;  %708 = vmatpush3.bf16.msra.mxu1 (!%p159_p3), %v740_v1 }
   0xd   : > { %679 = vmatprep.subr.bf16.mxu0 (!%p159_p3), %v741_v2  ;;  %701 = vmatprep.subr.bf16.mxu1 (!%p159_p3), %v741_v2 }
   0xe   : > { %s882_s18 = smov (!%p190_p4, %s605_s18), 15  ;;  %s884_s12 = smov (!%p204_p5, %s765_s12), 1 }
   0xf   : > { %s606_s23 = sshll.u32 %s882_s18, 2  ;;  %s609_s17 = sshll.u32 %s884_s12, 1 }
  0x10   : > { %s833_s26 = scalar_lea.vmem %s873_s0, %s606_s23  ;;  %680 = vmatpush3.bf16.msra.mxu0 %v741_v2  ;;  %709 = vmatpush3.bf16.msra.mxu1 %v741_v2  ;;  %s202_s16 = scalar_lea.vmem %s875_s2, %s606_s23 }
  0x11   : > { %v747_v4 = vld [vmem:[%s833_s26] sm:$0xff]   ;;  %v749_v5 = vld [vmem:[%s833_s26 + $0x10] sm:$0xff]   ;;  %681 = vmatprep.subr.bf16.mxu0 %v742_v3  ;;  %702 = vmatprep.subr.bf16.mxu1 %v742_v3  ;;  %v748_v10 = vld [vmem:[%s833_s26 + $0x8] sm:$0xff]   ;;  %s207_s20 = scalar_lea.vmem %s876_s3, %s609_s17 }
  0x12   : > { %691 = vmatprep.mubr.bf16.mxu0 %v747_v4  ;;  %695 = vmatprep.mubr.bf16.mxu1 %v749_v5  ;;  %v750_v11 = vld [vmem:[%s833_s26 + $0x18] sm:$0xff]  }
  0x14   : > { %682 = vmatpush3.bf16.msra.mxu0 %v742_v3  ;;  %710 = vmatpush3.bf16.msra.mxu1 %v742_v3 }
  0x15   : > { %683 = vmatprep.subr.bf16.mxu0 %v743_v6  ;;  %703 = vmatprep.subr.bf16.mxu1 %v743_v6 }
  0x18   : > { %684 = vmatpush3.bf16.msra.mxu0 %v743_v6  ;;  %711 = vmatpush3.bf16.msra.mxu1 %v743_v6 }
  0x19   : > { %685 = vmatprep.subr.bf16.mxu0 %v744_v7  ;;  %704 = vmatprep.subr.bf16.mxu1 %v744_v7 }
  0x1c   : > { %686 = vmatpush3.bf16.msra.mxu0 %v744_v7  ;;  %712 = vmatpush3.bf16.msra.mxu1 %v744_v7 }
  0x1d   : > { %687 = vmatprep.subr.bf16.mxu0 %v745_v8  ;;  %705 = vmatprep.subr.bf16.mxu1 %v745_v8 }
  0x20   : > { %688 = vmatpush3.bf16.msra.mxu0 %v745_v8  ;;  %713 = vmatpush3.bf16.msra.mxu1 %v745_v8 }
  0x21   : > { %689 = vmatprep.subr.bf16.mxu0 %v746_v9  ;;  %706 = vmatprep.subr.bf16.mxu1 %v746_v9 }
  0x24   : > { %690 = vmatpush3.bf16.msra.mxu0 %v746_v9  ;;  %714 = vmatpush3.bf16.msra.mxu1 %v746_v9 }
  0x27   : > { %692 = vmatmul.mubr.bf16.vlgmr.msra.gmra.mrb[0].mxu0 %v748_v10  ;;  %696 = vmatmul.mubr.bf16.vlgmr.msra.gmra.mrb[0].mxu1 %v750_v11 }
  0xfa   : > { %v693_v12 = vpop.f32.mrb[0].mxu0  ;;  %v697_v13 = vpop.f32.mrb[0].mxu1 }
  0xfb   : > { %v364_v14 = vpop.f32.mrb[1].mxu0  ;;  %v380_v15 = vpop.f32.mrb[1].mxu1  ;;  %v477_v27 = vmul.f32 %v693_v12, %v693_v12  ;;  %v481_v39 = vmul.f32 %v697_v13, %v697_v13 }
  0xfc   : > { %v694_v16 = vpop.f32.mrb[2].mxu0  ;;  %v698_v17 = vpop.f32.mrb[2].mxu1  ;;  %v475_v18 = vmul.f32 %v364_v14, %v364_v14  ;;  %v479_v33 = vmul.f32 %v380_v15, %v380_v15 }
  0xfd   : > { %v648_v19 = vpack.c.bf16 %v694_v16, %v693_v12  ;;  %v367_v20 = vpop.f32.mrb[3].mxu0  ;;  %v658_v21 = vpack.c.bf16 %v698_v17, %v697_v13  ;;  %v383_v22 = vpop.f32.mrb[3].mxu1  ;;  %v478_v30 = vmul.f32 %v694_v16, %v694_v16  ;;  %v482_v42 = vmul.f32 %v698_v17, %v698_v17 }
  0xfe   : > { %v643_v23 = vpack.c.bf16 %v367_v20, %v364_v14  ;;  %v462_v24 = vadd.f32 %v367_v20, %v364_v14  ;;  %v476_v25 = vmul.f32 %v367_v20, %v367_v20  ;;  %v653_v26 = vpack.c.bf16 %v383_v22, %v380_v15 }
  0xff   : > { %660 = vst [vmem:[%s202_s16 + $0x8] sm:$0xff] %v648_v19   ;;  %662 = vst [vmem:[%s202_s16 + $0x18] sm:$0xff] %v658_v21   ;;  %v480_v38 = vmul.f32 %v383_v22, %v383_v22 }
 0x100   : > { %644 = vst [vmem:[%s202_s16] sm:$0xff] %v643_v23   ;;  %v463_v28 = vadd.f32 %v693_v12, %v462_v24  ;;  %v483_v29 = vadd.f32 %v476_v25, %v475_v18  ;;  %661 = vst [vmem:[%s202_s16 + $0x10] sm:$0xff] %v653_v26  }
 0x102   : > { %v484_v31 = vadd.f32 %v483_v29, %v477_v27  ;;  %v464_v32 = vadd.f32 %v694_v16, %v463_v28 }
 0x104   : > { %v465_v34 = vadd.f32 %v464_v32, %v380_v15  ;;  %v485_v35 = vadd.f32 %v484_v31, %v478_v30 }
 0x106   : > { %v486_v36 = vadd.f32 %v485_v35, %v479_v33  ;;  %v466_v37 = vadd.f32 %v465_v34, %v383_v22 }
 0x108   : > { %v467_v40 = vadd.f32 %v697_v13, %v466_v37  ;;  %v487_v41 = vadd.f32 %v486_v36, %v480_v38 }
 0x10a   : > { %v468_v43 = vadd.f32 %v698_v17, %v467_v40  ;;  %v488_v44 = vadd.f32 %v487_v41, %v481_v39 }
 0x10c   : > { %v469_v45 = vrot.slane %v468_v43, 4  ;;  %v489_v46 = vadd.f32 %v488_v44, %v482_v42 }
 0x10e   : > { %v470_v47 = vadd.f32 %v469_v45, %v468_v43  ;;  %v490_v48 = vrot.slane %v489_v46, 4 }
 0x110   : > { %v471_v49 = vrot.slane %v470_v47, 2  ;;  %v491_v50 = vadd.f32 %v490_v48, %v489_v46 }
 0x112   : > { %v472_v51 = vadd.f32 %v471_v49, %v470_v47  ;;  %v492_v52 = vrot.slane %v491_v50, 2 }
 0x114   : > { %v473_v53 = vrot.slane %v472_v51, 1  ;;  %v493_v54 = vadd.f32 %v492_v52, %v491_v50 }
 0x116   : > { %v494_v55 = vrot.slane %v493_v54, 1  ;;  %v474_v56 = vadd.f32 %v473_v53, %v472_v51 }
 0x118   : > { %v495_v57 = vadd.f32 %v494_v55, %v493_v54 }
 0x11a   : > { %v497_v58 = vsel %vm496_vm0, %v474_v56, %v495_v57 }
 0x11b   : > { %498 = vst [vmem:[%s207_s20] sm:$0x3] %v497_v58 }
 0x11c PF: > { %s14_s14 = sadd.s32 1, %s773_s14   ;;  %s877_s12 = smov %s769_s13 }
 0x11d   : > { %p11_p6 = scmp.ge.s32.totalorder %s14_s14, 4   ;;  %s878_s13 = smov %s880_s15 }
 0x11f   :  { %13 = sbr.rel (!%p11_p6) target bundleno = 2 (0x2), region = 79 }

// kernel: frac_blk_forward.7
= control target key start
LH: loop header
LB: loop body
LE: loop exit
PB: predicated region body
PF: predicated region fallthrough
CT: control target
= control target key end

     0   :  { %s448_s12 = smov 0   ;;  %s537_s0 = inlined_call_operand.vmem [shape: bf16[128,128], index: 0, kind: input, shape index: {}]   ;;  %s538_s1 = inlined_call_operand.vmem [shape: bf16[128,128], index: 1, kind: input, shape index: {}]   ;;  %s539_s2 = inlined_call_operand.vmem [shape: f32[4,128], index: 2, kind: input, shape index: {}]   ;;  %s540_s3 = inlined_call_operand.vmem [shape: f32[128,128], index: 3, kind: output, shape index: {}]  }
   0x1 LB: > { %s361_s13 = sadd.s32 4294967295, %s426_s12   ;;  %p365_p0 = scmp.ge.s32.totalorder %s426_s12, 1  ;;  %s426_s12 = sphi %s448_s12, %s13_s12  }
   0x2   : > { %p149_p1 = scmp.lt.s32.totalorder %s426_s12, 3 }
   0x4   : > { %p150_p2 = pnand %p365_p0, %p149_p1 }
   0x5   : > { %s366_s14 = sshll.u32 (!%p150_p2), %s361_s13, 3  ;;  %v213_v0 = vlaneseq (!%p150_p2)  ;;  %v196_v2 = vld [vmem:[%s539_s2] sm:$0xf] (!%p150_p2) }
   0x6   : > { %153 = sbr.rel (%p150_p2) target bundleno = 36 (0x24), region = 32  ;;  %p179_p3 = scmp.lt.s32.totalorder (!%p150_p2), %s366_s14, 15 }
   0x7   : > { %v214_v1 = vshrl.u32 (!%p150_p2), %v213_v0, 7 }
   0x9   : > { %v215_v3 = vsub.s32 (!%p150_p2), 0, %v214_v1  ;;  %v227_v4 = vsub.s32 (!%p150_p2), 1, %v214_v1  ;;  %v255_v5 = vsub.s32 (!%p150_p2), 2, %v214_v1  ;;  %v267_v6 = vsub.s32 (!%p150_p2), 3, %v214_v1 }
   0xb   : > { %v472_v7 = vrot.slane (!%p150_p2), %v196_v2, %v215_v3  ;;  %v474_v8 = vrot.slane (!%p150_p2), %v196_v2, %v255_v5  ;;  %v477_v10 = vrot.slane (!%p150_p2), %v196_v2, %v227_v4  ;;  %v480_v12 = vrot.slane (!%p150_p2), %v196_v2, %v267_v6 }
   0xd   : > { %s542_s14 = smov (!%p179_p3, %s366_s14), 15 }
   0xe   : > { %s367_s17 = sshll.u32 %s542_s14, 2  ;;  %s371_s24 = sshll.u32 %s542_s14, 3 }
   0xf   : > { %s465_s20 = scalar_lea.vmem %s537_s0, %s367_s17  ;;  %s470_s23 = scalar_lea.vmem %s538_s1, %s367_s17 }
  0x10   : > { %v375_v9 = vld [vmem:[%s465_s20] sm:$0xff]   ;;  %v406_v13 = vld [vmem:[%s465_s20 + $0x8] sm:$0xff]   ;;  %v407_v31 = vld [vmem:[%s465_s20 + $0x10] sm:$0xff]   ;;  %s502_s27 = scalar_lea.vmem %s540_s3, %s371_s24 }
  0x11   : > { %v391_v11 = vld [vmem:[%s470_s23] sm:$0xff]   ;;  %v376_v14 = vunpack.c.l.bf16 %v375_v9  ;;  %v377_v16 = vunpack.c.h.bf16 %v375_v9  ;;  %v409_v18 = vld [vmem:[%s470_s23 + $0x8] sm:$0xff]   ;;  %v380_v19 = vunpack.c.l.bf16 %v406_v13  ;;  %v381_v21 = vunpack.c.h.bf16 %v406_v13  ;;  %v410_v32 = vld [vmem:[%s470_s23 + $0x10] sm:$0xff]  }
  0x12   : > { %v392_v15 = vunpack.c.l.bf16 %v391_v11  ;;  %v393_v17 = vunpack.c.h.bf16 %v391_v11  ;;  %v396_v20 = vunpack.c.l.bf16 %v409_v18  ;;  %v397_v22 = vunpack.c.h.bf16 %v409_v18  ;;  %v408_v41 = vld [vmem:[%s465_s20 + $0x18] sm:$0xff]  }
  0x13   : > { %v217_v23 = vmul.f32 %v376_v14, %v472_v7  ;;  %v218_v25 = vmul.f32 %v377_v16, %v472_v7  ;;  %v219_v27 = vmul.f32 %v380_v19, %v472_v7  ;;  %v220_v29 = vmul.f32 %v381_v21, %v472_v7  ;;  %v411_v42 = vld [vmem:[%s470_s23 + $0x18] sm:$0xff]  }
  0x14   : > { %v257_v24 = vmul.f32 %v392_v15, %v474_v8  ;;  %v258_v26 = vmul.f32 %v393_v17, %v474_v8  ;;  %v259_v28 = vmul.f32 %v396_v20, %v474_v8  ;;  %v260_v30 = vmul.f32 %v397_v22, %v474_v8 }
  0x15   : > { %v229_v33 = vadd.f32 %v477_v10, %v217_v23  ;;  %v230_v35 = vadd.f32 %v477_v10, %v218_v25  ;;  %v231_v37 = vadd.f32 %v477_v10, %v219_v27  ;;  %v232_v39 = vadd.f32 %v477_v10, %v220_v29 }
  0x16   : > { %v269_v34 = vadd.f32 %v480_v12, %v257_v24  ;;  %v270_v36 = vadd.f32 %v480_v12, %v258_v26  ;;  %v271_v38 = vadd.f32 %v480_v12, %v259_v28  ;;  %v272_v40 = vadd.f32 %v480_v12, %v260_v30 }
  0x17   : > { %v384_v45 = vunpack.c.l.bf16 %v407_v31  ;;  %v400_v46 = vunpack.c.l.bf16 %v410_v32  ;;  %v385_v49 = vunpack.c.h.bf16 %v407_v31  ;;  %v401_v50 = vunpack.c.h.bf16 %v410_v32 }
  0x18   : > { %v277_v43 = vadd.f32 %v269_v34, %v229_v33  ;;  %v278_v44 = vadd.f32 %v270_v36, %v230_v35  ;;  %v279_v47 = vadd.f32 %v271_v38, %v231_v37  ;;  %v280_v48 = vadd.f32 %v272_v40, %v232_v39 }
  0x19   : > { %v221_v51 = vmul.f32 %v384_v45, %v472_v7  ;;  %v261_v52 = vmul.f32 %v400_v46, %v474_v8  ;;  %v388_v53 = vunpack.c.l.bf16 %v408_v41  ;;  %v404_v54 = vunpack.c.l.bf16 %v411_v42 }
  0x1a   : > { %285 = vst [vmem:[%s502_s27] sm:$0xff] %v277_v43  ;;  %286 = vst [vmem:[%s502_s27 + $0x8] sm:$0xff] %v278_v44  ;;  %v222_v55 = vmul.f32 %v385_v49, %v472_v7  ;;  %v262_v56 = vmul.f32 %v401_v50, %v474_v8  ;;  %v389_v57 = vunpack.c.h.bf16 %v408_v41  ;;  %v405_v58 = vunpack.c.h.bf16 %v411_v42 }
  0x1b   : > { %287 = vst [vmem:[%s502_s27 + $0x10] sm:$0xff] %v279_v47  ;;  %288 = vst [vmem:[%s502_s27 + $0x18] sm:$0xff] %v280_v48  ;;  %v233_v59 = vadd.f32 %v477_v10, %v221_v51  ;;  %v273_v60 = vadd.f32 %v480_v12, %v261_v52  ;;  %v223_v61 = vmul.f32 %v388_v53, %v472_v7 }
  0x1c   : > { %v263_v62 = vmul.f32 %v404_v54, %v474_v8  ;;  %v234_v63 = vadd.f32 %v477_v10, %v222_v55  ;;  %v274_v0 = vadd.f32 %v480_v12, %v262_v56  ;;  %v224_v1 = vmul.f32 %v389_v57, %v472_v7 }
  0x1d   : > { %v264_v2 = vmul.f32 %v405_v58, %v474_v8  ;;  %v281_v3 = vadd.f32 %v273_v60, %v233_v59  ;;  %v235_v4 = vadd.f32 %v477_v10, %v223_v61 }
  0x1e   : > { %v275_v5 = vadd.f32 %v480_v12, %v263_v62  ;;  %v282_v6 = vadd.f32 %v274_v0, %v234_v63  ;;  %v236_v9 = vadd.f32 %v477_v10, %v224_v1 }
  0x1f   : > { %v276_v11 = vadd.f32 %v480_v12, %v264_v2  ;;  %289 = vst [vmem:[%s502_s27 + $0x20] sm:$0xff] %v281_v3 }
  0x20   : > { %v283_v13 = vadd.f32 %v275_v5, %v235_v4  ;;  %290 = vst [vmem:[%s502_s27 + $0x28] sm:$0xff] %v282_v6 }
  0x21   : > { %v284_v14 = vadd.f32 %v276_v11, %v236_v9 }
  0x22   : > { %291 = vst [vmem:[%s502_s27 + $0x30] sm:$0xff] %v283_v13 }
  0x23   : > { %292 = vst [vmem:[%s502_s27 + $0x38] sm:$0xff] %v284_v14 }
  0x24 PF: > { %s13_s12 = sadd.s32 1, %s426_s12  }
  0x25   : > { %p10_p4 = scmp.ge.s32.totalorder %s13_s12, 4  }
  0x27   :  { %12 = sbr.rel (!%p10_p4) target bundleno = 1 (0x1), region = 65 }

</bundles_post_ra>
